<compile_context>
chip_gen: v7x
topology: tpu7x:2x2x1
jax: 0.10.0
libtpu: 0.0.40
codegen_flags: <defaults>
</compile_context>

<pallas_src>
import jax
import jax.numpy as jnp
from jax.experimental import pallas as pl
from jax.experimental.pallas import tpu as pltpu

IN_FEATURES = 64
OUT_FEATURES = 10

# Max rows per grid step.  ~2 KiB/row of double-buffered VMEM (x and out blocks
# are lane-padded to 128 lanes) -> ~17 MiB at 8192: safe on v5e/v6e/v7x.
TB_MAX = 8192
# Below this, Pallas launch/grid overhead dwarfs the ~KFLOPs of work; XLA's
# fused GEMM is already at the HBM roofline there.
MIN_PALLAS_BATCH = 1024


def _linear_kernel(x_ref, w_ref, b_ref, o_ref):
    # x_ref: (tb, 64)  w_ref: (64, 10)  b_ref: (1, 10) f32  o_ref: (tb, 10) f32
    acc = jnp.dot(x_ref[...], w_ref[...], preferred_element_type=jnp.float32)
    o_ref[...] = acc + b_ref[...]


def _choose_tb(batch):
    """Pick the batch tile: as large as possible, but keep >=4 grid steps."""
    tb = -(-batch // 4)          # cdiv(batch, 4): >=2 steps per TC on v7x
    tb = -(-tb // 8) * 8         # round up to a sublane multiple
    return max(8, min(TB_MAX, tb))


def _stolen_nn_pallas(x, weight_t, bias2d):
    """Tiled Pallas path. x: (B, 64), weight_t: (64, 10), bias2d: (1, 10) f32."""
    B = x.shape[0]
    tb = _choose_tb(B)
    n_tiles = pl.cdiv(B, tb)

    return pl.pallas_call(
        _linear_kernel,
        out_shape=jax.ShapeDtypeStruct((B, OUT_FEATURES), jnp.float32),
        grid_spec=pltpu.PrefetchScalarGridSpec(
            num_scalar_prefetch=0,
            grid=(n_tiles,),
            in_specs=[
                # x: one (tb, 64) tile per grid step -> pipelined DMA.  The
                # final block may be partial; OOB reads are clamped and the
                # corresponding output rows are dropped on write.
                pl.BlockSpec((tb, IN_FEATURES), lambda i: (i, 0)),
                # weight / bias: constant block -> stays resident in VMEM.
                pl.BlockSpec((IN_FEATURES, OUT_FEATURES), lambda i: (0, 0)),
                pl.BlockSpec((1, OUT_FEATURES), lambda i: (0, 0)),
            ],
            out_specs=pl.BlockSpec((tb, OUT_FEATURES), lambda i: (i, 0)),
        ),
        compiler_params=pltpu.CompilerParams(
            # Batch tiles are independent -> megacore sharding on v7x.
            dimension_semantics=("parallel",),
        ),
    )(x, weight_t, bias2d)


def stolen_nn_forward(x, weight, bias, *, use_bf16_x=False):
    """StolenNN.forward.  x: (B, 64), weight: (10, 64), bias: (10,) -> (B, 10)."""
    B = x.shape[0]
    if B < MIN_PALLAS_BATCH:
        # Small-batch path: launch overhead dominates; XLA GEMV is fine here.
        return x @ weight.T + bias

    weight_t = weight.T
    if use_bf16_x:
        # x reads are ~87% of HBM traffic; bf16 halves them.  MXU accumulation
        # stays f32 (preferred_element_type) and the bias add is f32.
        x = x.astype(jnp.bfloat16)
        weight_t = weight_t.astype(jnp.bfloat16)

    bias2d = bias.reshape(1, OUT_FEATURES).astype(jnp.float32)
    return _stolen_nn_pallas(x, weight_t, bias2d)


if __name__ == "__main__":
    key = jax.random.PRNGKey(0)
    k_x, k_w, k_b = jax.random.split(key, 3)

    # Deterministic parameter init (mimics torch.nn.Linear's uniform init bound).
    bound = 1.0 / jnp.sqrt(jnp.float32(IN_FEATURES))
    weight = jax.random.uniform(
        k_w, (OUT_FEATURES, IN_FEATURES), dtype=jnp.float32,
        minval=-bound, maxval=bound)
    bias = jax.random.uniform(
        k_b, (OUT_FEATURES,), dtype=jnp.float32, minval=-bound, maxval=bound)

    # Batch chosen to exercise the Pallas path, the >=4-step grid clamp AND the
    # partial final block: tb = round_up(cdiv(2248, 4), 8) = 568, 4 grid steps,
    # last step covers only 544 valid rows.
    B = 2248
    x = jax.random.normal(k_x, (B, IN_FEATURES), dtype=jnp.float32)
    ref = x @ weight.T + bias

    # f32 Pallas path (exact nn.Linear semantics).
    out = stolen_nn_forward(x, weight, bias)
    jax.block_until_ready(out)
    assert out.shape == (B, OUT_FEATURES)
    assert jnp.allclose(out, ref, atol=1e-5, rtol=1e-5)

    # Optional bf16-x path (looser tolerance; caller opts in).
    out_bf16 = stolen_nn_forward(x, weight, bias, use_bf16_x=True)
    jax.block_until_ready(out_bf16)
    assert jnp.allclose(out_bf16, ref, atol=2e-2, rtol=2e-2)

    # Small-batch (non-kernel) dispatch path.
    x_small = jax.random.normal(k_x, (8, IN_FEATURES), dtype=jnp.float32)
    out_small = stolen_nn_forward(x_small, weight, bias)
    jax.block_until_ready(out_small)
    assert jnp.allclose(out_small, x_small @ weight.T + bias, atol=1e-5, rtol=1e-5)

    print("KERNEL_OK")
</pallas_src>

<mosaic_0001>
module attributes {stable_mosaic.version = 11 : i64} {
  func.func @_linear_kernel(%arg0: i32, %arg1: memref<568x64xf32, #tpu.memory_space<vmem>>, %arg2: memref<64x10xf32, #tpu.memory_space<vmem>>, %arg3: memref<1x10xf32, #tpu.memory_space<vmem>>, %arg4: memref<568x10xf32, #tpu.memory_space<vmem>>) attributes {dimension_semantics = [#tpu.dimension_semantics<parallel>], iteration_bounds = array<i64: 4>, scalar_prefetch = 0 : i64, scratch_operands = 0 : i64, tpu.core_type = #tpu.core_type<tc>, window_params = [{transform_indices = @transform_0, window_bounds = array<i64: 568, 64>}, {pipeline_mode = #tpu.pipeline_mode<synchronous>, transform_indices = @transform_1, window_bounds = array<i64: 64, 10>}, {pipeline_mode = #tpu.pipeline_mode<synchronous>, transform_indices = @transform_2, window_bounds = array<i64: 1, 10>}, {transform_indices = @transform_3, window_bounds = array<i64: 568, 10>}]} {
    %c0 = arith.constant 0 : index
    %c0_0 = arith.constant 0 : index
    %0 = vector.load %arg1[%c0, %c0_0] : memref<568x64xf32, #tpu.memory_space<vmem>>, vector<568x64xf32>
    %c0_1 = arith.constant 0 : index
    %c0_2 = arith.constant 0 : index
    %1 = vector.load %arg2[%c0_1, %c0_2] : memref<64x10xf32, #tpu.memory_space<vmem>>, vector<64x10xf32>
    %cst = arith.constant dense<0.000000e+00> : vector<568x10xf32>
    %2 = tpu.matmul %0, %1, %cst {dimension_numbers = #tpu.dot_dimension_numbers<[1], [0], [0], [1], [0, 0, 1, 1], [], []>} : vector<568x64xf32>, vector<64x10xf32>, vector<568x10xf32> -> vector<568x10xf32>
    %c0_3 = arith.constant 0 : index
    %c0_4 = arith.constant 0 : index
    %3 = vector.load %arg3[%c0_3, %c0_4] : memref<1x10xf32, #tpu.memory_space<vmem>>, vector<1x10xf32>
    %4 = vector.broadcast %3 : vector<1x10xf32> to vector<568x10xf32>
    %5 = arith.addf %2, %4 : vector<568x10xf32>
    %c0_5 = arith.constant 0 : index
    %c0_6 = arith.constant 0 : index
    %6 = vector.load %arg4[%c0_5, %c0_6] : memref<568x10xf32, #tpu.memory_space<vmem>>, vector<568x10xf32>
    tpu.vector_store %arg4[%c0_5, %c0_6], %5 {strides = array<i32>} : memref<568x10xf32, #tpu.memory_space<vmem>>, vector<568x10xf32>,
    return
  }
  func.func @transform_0(%arg0: i32) -> (i32, i32) {
    %c0_i32 = arith.constant 0 : i32
    %c0_i32_0 = arith.constant 0 : i32
    return %arg0, %c0_i32 : i32, i32
  }
  func.func @transform_1(%arg0: i32) -> (i32, i32) {
    %c0_i32 = arith.constant 0 : i32
    %c0_i32_0 = arith.constant 0 : i32
    %c0_i32_1 = arith.constant 0 : i32
    return %c0_i32, %c0_i32_0 : i32, i32
  }
  func.func @transform_2(%arg0: i32) -> (i32, i32) {
    %c0_i32 = arith.constant 0 : i32
    %c0_i32_0 = arith.constant 0 : i32
    %c0_i32_1 = arith.constant 0 : i32
    return %c0_i32, %c0_i32_0 : i32, i32
  }
  func.func @transform_3(%arg0: i32) -> (i32, i32) {
    %c0_i32 = arith.constant 0 : i32
    %c0_i32_0 = arith.constant 0 : i32
    return %arg0, %c0_i32 : i32, i32
  }
}

</mosaic_0001>

<bundles_post_ra>
// kernel: tpu_custom_call.1
= control target key start
LH: loop header
LB: loop body
LE: loop exit
PB: predicated region body
PF: predicated region fallthrough
CT: control target
= control target key end

     0   :  { %s2077_s12 = smov 0   ;;  %s2079_s13 = smov 0   ;;  %s2851_s0 = inlined_call_operand.vmem [shape: f32[2248,64], index: 0, kind: input, shape index: {}]   ;;  %s2852_s1 = inlined_call_operand.vmem [shape: f32[64,10], index: 1, kind: input, shape index: {}]   ;;  %s2853_s2 = inlined_call_operand.vmem [shape: f32[1,10], index: 2, kind: input, shape index: {}]   ;;  %s2854_s3 = inlined_call_operand.vmem [shape: f32[2248,10], index: 3, kind: output, shape index: {}]  }
   0x1   :  { %s2081_s14 = smov 0  }
   0x2 LB: > { %s2090_s15 = sadd.s32 4294967295, %s2020_s14   ;;  %s2092_s16 = sadd.s32 1, %s2020_s14   ;;  %s2020_s14 = sphi %s2081_s14, %s2863_s14   ;;  %s2016_s13 = sphi %s2079_s13, %s2862_s13   ;;  %s2012_s12 = sphi %s2077_s12, %s2861_s12  }
   0x3   : > { %s85_s17 = ssub.s32 %s2020_s14, %s2092_s16  ;;  %s88_s18 = sadd.s32 1, %s2016_s13 }
   0x4   : > { %p86_p0 = scmp.eq.s32.totalorder %s85_s17, 0  ;;  %p98_p1 = scmp.ne.s32.totalorder %s2016_s13, %s2012_s12 }
   0x5   : > { %p99_p2 = scmp.eq.s32.totalorder %s2090_s15, 3  ;;  %p1454_p3 = scmp.ge.s32.totalorder %s2020_s14, 1 }
   0x6   : > { %s2100_s19 = scalar_select %p86_p0, %s2016_s13, %s88_s18  }
   0x7   : > { %p2102_p4 = por %p99_p2, %p98_p1  ;;  %p146_p5 = scmp.lt.s32.totalorder %s2020_s14, 5 }
   0x9   : > { %p147_p6 = pnand %p1454_p3, %p146_p5 }
   0xa   : > { %v263_v0 = vld [vmem:[%s2852_s1] sm:$0xff] (!%p147_p6)  ;;  %v264_v1 = vld [vmem:[%s2852_s1 + $0x8] sm:$0xff] (!%p147_p6)  ;;  %v265_v2 = vld [vmem:[%s2852_s1 + $0x10] sm:$0xff] (!%p147_p6)  ;;  %v2054_v3 = vmov (!%p147_p6), 0.0|0.0   ;;  %s2119_s29 = smul.u32 (!%p147_p6), 71, %s2090_s15  ;;  %vm2055_vm0 = vmmov (!%p147_p6), 0  }
   0xb   : > { %150 = sbr.rel (%p147_p6) target bundleno = 455 (0x1c7), region = 32  ;;  %1854 = vmatprep.subr.bf16.mxu0 (!%p147_p6), %v2054_v3  ;;  %v1855_v4 = vpack.c.bf16 (!%p147_p6), %v264_v1, %v263_v0  ;;  %1866 = vmatprep.subr.bf16.mxu1 (!%p147_p6), %v2054_v3  ;;  %v266_v5 = vld [vmem:[%s2852_s1 + $0x18] sm:$0xff] (!%p147_p6)  ;;  %v2056_v6 = vmov (!%p147_p6), 0.0   ;;  %v267_v8 = vld [vmem:[%s2852_s1 + $0x20] sm:$0xff] (!%p147_p6)  ;;  %v268_v9 = vld [vmem:[%s2852_s1 + $0x28] sm:$0xff] (!%p147_p6)  ;;  %vm278_vm1 = vcmask (!%p147_p6), 523264  }
   0xc   : > { %1641 = vmatprep.mubr.msk.f32.mxu0 (!%p147_p6), %vm2055_vm0, %v2056_v6  ;;  %1749 = vmatprep.mubr.msk.f32.mxu1 (!%p147_p6), %vm2055_vm0, %v2056_v6  ;;  %v1858_v7 = vpack.c.bf16 (!%p147_p6), %v266_v5, %v265_v2  ;;  %p178_p7 = scmp.lt.s32.totalorder (!%p147_p6), %s2119_s29, 280  ;;  %v1861_v10 = vpack.c.bf16 (!%p147_p6), %v268_v9, %v267_v8  ;;  %v269_v11 = vld [vmem:[%s2852_s1 + $0x30] sm:$0xff] (!%p147_p6)  ;;  %v270_v12 = vld [vmem:[%s2852_s1 + $0x38] sm:$0xff] (!%p147_p6)  ;;  %s170_s22 = sand.u32 (!%p147_p6), 1, %s2012_s12   ;;  %vm912_vm2 = vcmask (!%p147_p6), 80896  }
   0xd   : > { %1856 = vmatpush3.bf16.msra.mxu0 (!%p147_p6), %v1855_v4  ;;  %1870 = vmatpush3.bf16.msra.mxu1 (!%p147_p6), %v1855_v4  ;;  %v1864_v13 = vpack.c.bf16 (!%p147_p6), %v270_v12, %v269_v11  ;;  %s1874_s23 = smul.u32 (!%p147_p6), 568, %s170_s22 }
   0xe   : > { %1857 = vmatprep.subr.bf16.mxu0 (!%p147_p6), %v2054_v3  ;;  %1867 = vmatprep.subr.bf16.mxu1 (!%p147_p6), %v2054_v3 }
   0xf   : > { %s2432_s26 = scalar_lea.vmem (!%p147_p6), [#allocation2], %s1874_s23  }
  0x11   : > { %1859 = vmatpush3.bf16.msra.mxu0 (!%p147_p6), %v1858_v7  ;;  %1871 = vmatpush3.bf16.msra.mxu1 (!%p147_p6), %v1858_v7 }
  0x12   : > { %s179_s7 = scalar_select %p178_p7, %s2119_s29, 280  ;;  %1860 = vmatprep.subr.bf16.mxu0 %v2054_v3  ;;  %1868 = vmatprep.subr.bf16.mxu1 %v2054_v3 }
  0x13   : > { %s992_s12 = ssub.s32 (%p2102_p4), 281, %s2119_s29  ;;  %s1543_s27 = smul.u32 (%p2102_p4), 568, %s2090_s15 }
  0x14   : > { %s1455_s14 = sshll.u32 %s179_s7, 3  ;;  %p993_p8 = scmp.lt.s32.totalorder (%p2102_p4), %s992_s12, 71 }
  0x15   : > { %1862 = vmatpush3.bf16.msra.mxu0 %v1861_v10  ;;  %1872 = vmatpush3.bf16.msra.mxu1 %v1861_v10  ;;  %s2142_s21 = scalar_lea.vmem %s2851_s0, %s1455_s14  ;;  %s2652_s4 = scalar_lea.vmem (%p2102_p4), %s2854_s3, %s1543_s27  }
  0x16   : > { %1863 = vmatprep.subr.bf16.mxu0 %v2054_v3  ;;  %1869 = vmatprep.subr.bf16.mxu1 %v2054_v3  ;;  %v192_v14 = vld [vmem:[%s2142_s21] sm:$0xff]  ;;  %v193_v16 = vld [vmem:[%s2142_s21 + $0x8] sm:$0xff]  ;;  %v194_v18 = vld [vmem:[%s2142_s21 + $0x10] sm:$0xff] }
  0x17   : > { %v228_v15 = vld [vmem:[%s2142_s21 + $0x120] sm:$0xff]  ;;  %v229_v17 = vld [vmem:[%s2142_s21 + $0x128] sm:$0xff]  ;;  %v230_v19 = vld [vmem:[%s2142_s21 + $0x130] sm:$0xff] }
  0x18   : > { %v195_v20 = vld [vmem:[%s2142_s21 + $0x18] sm:$0xff]  ;;  %v196_v22 = vld [vmem:[%s2142_s21 + $0x20] sm:$0xff]  ;;  %v197_v24 = vld [vmem:[%s2142_s21 + $0x28] sm:$0xff] }
  0x19   : > { %1865 = vmatpush3.bf16.msra.mxu0 %v1864_v13  ;;  %1873 = vmatpush3.bf16.msra.mxu1 %v1864_v13  ;;  %v231_v21 = vld [vmem:[%s2142_s21 + $0x138] sm:$0xff]  ;;  %v232_v23 = vld [vmem:[%s2142_s21 + $0x140] sm:$0xff]  ;;  %v233_v25 = vld [vmem:[%s2142_s21 + $0x148] sm:$0xff] }
  0x1a   : > { %v198_v26 = vld [vmem:[%s2142_s21 + $0x30] sm:$0xff]  ;;  %v199_v28 = vld [vmem:[%s2142_s21 + $0x38] sm:$0xff]  ;;  %v200_v30 = vld [vmem:[%s2142_s21 + $0x40] sm:$0xff] }
  0x1b   : > { %v234_v27 = vld [vmem:[%s2142_s21 + $0x150] sm:$0xff]  ;;  %v235_v29 = vld [vmem:[%s2142_s21 + $0x158] sm:$0xff]  ;;  %v236_v31 = vld [vmem:[%s2142_s21 + $0x160] sm:$0xff] }
  0x1c   : > { %1642 = vmatmul.mubr.msk.f32.vlgmr.msra.gmra.mrb[0].mxu0 %vm278_vm1, %v192_v14  ;;  %1750 = vmatmul.mubr.msk.f32.vlgmr.msra.gmra.mrb[0].mxu1 %vm278_vm1, %v228_v15  ;;  %v201_v32 = vld [vmem:[%s2142_s21 + $0x48] sm:$0xff]  ;;  %v202_v34 = vld [vmem:[%s2142_s21 + $0x50] sm:$0xff]  ;;  %v203_v36 = vld [vmem:[%s2142_s21 + $0x58] sm:$0xff] }
  0x1d   : > { %1644 = vmatprep.mubr.msk.f32.mxu0 %vm2055_vm0, %v2056_v6  ;;  %1752 = vmatprep.mubr.msk.f32.mxu1 %vm2055_vm0, %v2056_v6  ;;  %v237_v33 = vld [vmem:[%s2142_s21 + $0x168] sm:$0xff]  ;;  %v238_v35 = vld [vmem:[%s2142_s21 + $0x170] sm:$0xff]  ;;  %v239_v37 = vld [vmem:[%s2142_s21 + $0x178] sm:$0xff] }
  0x1e   : > { %v204_v38 = vld [vmem:[%s2142_s21 + $0x60] sm:$0xff]  ;;  %v205_v40 = vld [vmem:[%s2142_s21 + $0x68] sm:$0xff]  ;;  %v206_v42 = vld [vmem:[%s2142_s21 + $0x70] sm:$0xff] }
  0x1f   : > { %v240_v39 = vld [vmem:[%s2142_s21 + $0x180] sm:$0xff]  ;;  %v241_v41 = vld [vmem:[%s2142_s21 + $0x188] sm:$0xff]  ;;  %v242_v43 = vld [vmem:[%s2142_s21 + $0x190] sm:$0xff] }
  0x20   : > { %1645 = vmatmul.mubr.msk.f32.gmra.mrb[2].mxu0 %vm278_vm1, %v193_v16  ;;  %1753 = vmatmul.mubr.msk.f32.gmra.mrb[2].mxu1 %vm278_vm1, %v229_v17  ;;  %v207_v44 = vld [vmem:[%s2142_s21 + $0x78] sm:$0xff]  ;;  %v208_v46 = vld [vmem:[%s2142_s21 + $0x80] sm:$0xff]  ;;  %v209_v48 = vld [vmem:[%s2142_s21 + $0x88] sm:$0xff] }
  0x21   : > { %1647 = vmatprep.mubr.msk.f32.mxu0 %vm2055_vm0, %v2056_v6  ;;  %1755 = vmatprep.mubr.msk.f32.mxu1 %vm2055_vm0, %v2056_v6  ;;  %v243_v45 = vld [vmem:[%s2142_s21 + $0x198] sm:$0xff]  ;;  %v244_v47 = vld [vmem:[%s2142_s21 + $0x1a0] sm:$0xff]  ;;  %v245_v49 = vld [vmem:[%s2142_s21 + $0x1a8] sm:$0xff] }
  0x22   : > { %v210_v50 = vld [vmem:[%s2142_s21 + $0x90] sm:$0xff]  ;;  %v211_v52 = vld [vmem:[%s2142_s21 + $0x98] sm:$0xff]  ;;  %v212_v54 = vld [vmem:[%s2142_s21 + $0xa0] sm:$0xff] }
  0x23   : > { %v246_v51 = vld [vmem:[%s2142_s21 + $0x1b0] sm:$0xff]  ;;  %v247_v53 = vld [vmem:[%s2142_s21 + $0x1b8] sm:$0xff]  ;;  %v248_v55 = vld [vmem:[%s2142_s21 + $0x1c0] sm:$0xff] }
  0x24   : > { %1648 = vmatmul.mubr.msk.f32.gmra.mrb[4].mxu0 %vm278_vm1, %v194_v18  ;;  %1756 = vmatmul.mubr.msk.f32.gmra.mrb[4].mxu1 %vm278_vm1, %v230_v19  ;;  %v213_v56 = vld [vmem:[%s2142_s21 + $0xa8] sm:$0xff]  ;;  %v214_v58 = vld [vmem:[%s2142_s21 + $0xb0] sm:$0xff]  ;;  %v215_v60 = vld [vmem:[%s2142_s21 + $0xb8] sm:$0xff] }
  0x25   : > { %1650 = vmatprep.mubr.msk.f32.mxu0 %vm2055_vm0, %v2056_v6  ;;  %1758 = vmatprep.mubr.msk.f32.mxu1 %vm2055_vm0, %v2056_v6  ;;  %v249_v57 = vld [vmem:[%s2142_s21 + $0x1c8] sm:$0xff]  ;;  %v250_v59 = vld [vmem:[%s2142_s21 + $0x1d0] sm:$0xff]  ;;  %v251_v61 = vld [vmem:[%s2142_s21 + $0x1d8] sm:$0xff] }
  0x26   : > { %v216_v62 = vld [vmem:[%s2142_s21 + $0xc0] sm:$0xff]  ;;  %v217_v0 = vld [vmem:[%s2142_s21 + $0xc8] sm:$0xff]  ;;  %v218_v2 = vld [vmem:[%s2142_s21 + $0xd0] sm:$0xff] }
  0x27   : > { %v252_v63 = vld [vmem:[%s2142_s21 + $0x1e0] sm:$0xff]  ;;  %v253_v1 = vld [vmem:[%s2142_s21 + $0x1e8] sm:$0xff]  ;;  %v254_v3 = vld [vmem:[%s2142_s21 + $0x1f0] sm:$0xff] }
  0x28   : > { %1651 = vmatmul.mubr.msk.f32.gmra.mrb[6].mxu0 %vm278_vm1, %v195_v20  ;;  %1759 = vmatmul.mubr.msk.f32.gmra.mrb[6].mxu1 %vm278_vm1, %v231_v21  ;;  %v219_v4 = vld [vmem:[%s2142_s21 + $0xd8] sm:$0xff]  ;;  %v220_v7 = vld [vmem:[%s2142_s21 + $0xe0] sm:$0xff]  ;;  %v221_v9 = vld [vmem:[%s2142_s21 + $0xe8] sm:$0xff] }
  0x29   : > { %1653 = vmatprep.mubr.msk.f32.mxu0 %vm2055_vm0, %v2056_v6  ;;  %1761 = vmatprep.mubr.msk.f32.mxu1 %vm2055_vm0, %v2056_v6  ;;  %v255_v5 = vld [vmem:[%s2142_s21 + $0x1f8] sm:$0xff]  ;;  %v256_v8 = vld [vmem:[%s2142_s21 + $0x200] sm:$0xff]  ;;  %v257_v10 = vld [vmem:[%s2142_s21 + $0x208] sm:$0xff] }
  0x2a   : > { %v222_v11 = vld [vmem:[%s2142_s21 + $0xf0] sm:$0xff]  ;;  %v223_v13 = vld [vmem:[%s2142_s21 + $0xf8] sm:$0xff]  ;;  %v224_v15 = vld [vmem:[%s2142_s21 + $0x100] sm:$0xff] }
  0x2b   : > { %v258_v12 = vld [vmem:[%s2142_s21 + $0x210] sm:$0xff]  ;;  %v259_v14 = vld [vmem:[%s2142_s21 + $0x218] sm:$0xff]  ;;  %v260_v16 = vld [vmem:[%s2142_s21 + $0x220] sm:$0xff] }
  0x2c   : > { %1654 = vmatmul.mubr.msk.f32.gmra.mrb[8].mxu0 %vm278_vm1, %v196_v22  ;;  %1762 = vmatmul.mubr.msk.f32.gmra.mrb[8].mxu1 %vm278_vm1, %v232_v23  ;;  %v225_v17 = vld [vmem:[%s2142_s21 + $0x108] sm:$0xff]  ;;  %v226_v19 = vld [vmem:[%s2142_s21 + $0x110] sm:$0xff]  ;;  %v227_v21 = vld [vmem:[%s2142_s21 + $0x118] sm:$0xff] }
  0x2d   : > { %1656 = vmatprep.mubr.msk.f32.mxu0 %vm2055_vm0, %v2056_v6  ;;  %1764 = vmatprep.mubr.msk.f32.mxu1 %vm2055_vm0, %v2056_v6  ;;  %v261_v18 = vld [vmem:[%s2142_s21 + $0x228] sm:$0xff]  ;;  %v262_v20 = vld [vmem:[%s2142_s21 + $0x230] sm:$0xff]  ;;  %v2428_v22 = vld [vmem:[%s2853_s2] ss:$0 sm:$0xff] }
  0x30   : > { %1657 = vmatmul.mubr.msk.f32.gmra.mrb[10].mxu0 %vm278_vm1, %v197_v24  ;;  %1765 = vmatmul.mubr.msk.f32.gmra.mrb[10].mxu1 %vm278_vm1, %v233_v25 }
  0x31   : > { %1659 = vmatprep.mubr.msk.f32.mxu0 %vm2055_vm0, %v2056_v6  ;;  %1767 = vmatprep.mubr.msk.f32.mxu1 %vm2055_vm0, %v2056_v6 }
  0x34   : > { %1660 = vmatmul.mubr.msk.f32.gmra.mrb[12].mxu0 %vm278_vm1, %v198_v26  ;;  %1768 = vmatmul.mubr.msk.f32.gmra.mrb[12].mxu1 %vm278_vm1, %v234_v27 }
  0x35   : > { %1662 = vmatprep.mubr.msk.f32.mxu0 %vm2055_vm0, %v2056_v6  ;;  %1770 = vmatprep.mubr.msk.f32.mxu1 %vm2055_vm0, %v2056_v6 }
  0x38   : > { %1663 = vmatmul.mubr.msk.f32.gmra.mrb[14].mxu0 %vm278_vm1, %v199_v28  ;;  %1771 = vmatmul.mubr.msk.f32.gmra.mrb[14].mxu1 %vm278_vm1, %v235_v29 }
  0x39   : > { %1665 = vmatprep.mubr.msk.f32.mxu0 %vm2055_vm0, %v2056_v6  ;;  %1773 = vmatprep.mubr.msk.f32.mxu1 %vm2055_vm0, %v2056_v6 }
  0x3c   : > { %1666 = vmatmul.mubr.msk.f32.gmra.mrb[16].mxu0 %vm278_vm1, %v200_v30  ;;  %1774 = vmatmul.mubr.msk.f32.gmra.mrb[16].mxu1 %vm278_vm1, %v236_v31 }
  0x3d   : > { %1668 = vmatprep.mubr.msk.f32.mxu0 %vm2055_vm0, %v2056_v6  ;;  %1776 = vmatprep.mubr.msk.f32.mxu1 %vm2055_vm0, %v2056_v6 }
  0x40   : > { %1669 = vmatmul.mubr.msk.f32.gmra.mrb[18].mxu0 %vm278_vm1, %v201_v32  ;;  %1777 = vmatmul.mubr.msk.f32.gmra.mrb[18].mxu1 %vm278_vm1, %v237_v33 }
  0x41   : > { %1671 = vmatprep.mubr.msk.f32.mxu0 %vm2055_vm0, %v2056_v6  ;;  %1779 = vmatprep.mubr.msk.f32.mxu1 %vm2055_vm0, %v2056_v6 }
  0x44   : > { %1672 = vmatmul.mubr.msk.f32.gmra.mrb[20].mxu0 %vm278_vm1, %v202_v34  ;;  %1780 = vmatmul.mubr.msk.f32.gmra.mrb[20].mxu1 %vm278_vm1, %v238_v35 }
  0x45   : > { %1674 = vmatprep.mubr.msk.f32.mxu0 %vm2055_vm0, %v2056_v6  ;;  %1782 = vmatprep.mubr.msk.f32.mxu1 %vm2055_vm0, %v2056_v6 }
  0x48   : > { %1675 = vmatmul.mubr.msk.f32.gmra.mrb[22].mxu0 %vm278_vm1, %v203_v36  ;;  %1783 = vmatmul.mubr.msk.f32.gmra.mrb[22].mxu1 %vm278_vm1, %v239_v37 }
  0x49   : > { %1677 = vmatprep.mubr.msk.f32.mxu0 %vm2055_vm0, %v2056_v6  ;;  %1785 = vmatprep.mubr.msk.f32.mxu1 %vm2055_vm0, %v2056_v6 }
  0x4c   : > { %1678 = vmatmul.mubr.msk.f32.gmra.mrb[24].mxu0 %vm278_vm1, %v204_v38  ;;  %1786 = vmatmul.mubr.msk.f32.gmra.mrb[24].mxu1 %vm278_vm1, %v240_v39 }
  0x4d   : > { %1680 = vmatprep.mubr.msk.f32.mxu0 %vm2055_vm0, %v2056_v6  ;;  %1788 = vmatprep.mubr.msk.f32.mxu1 %vm2055_vm0, %v2056_v6 }
  0x50   : > { %1681 = vmatmul.mubr.msk.f32.gmra.mrb[26].mxu0 %vm278_vm1, %v205_v40  ;;  %1789 = vmatmul.mubr.msk.f32.gmra.mrb[26].mxu1 %vm278_vm1, %v241_v41 }
  0x51   : > { %1683 = vmatprep.mubr.msk.f32.mxu0 %vm2055_vm0, %v2056_v6  ;;  %1791 = vmatprep.mubr.msk.f32.mxu1 %vm2055_vm0, %v2056_v6 }
  0x54   : > { %1684 = vmatmul.mubr.msk.f32.gmra.mrb[28].mxu0 %vm278_vm1, %v206_v42  ;;  %1792 = vmatmul.mubr.msk.f32.gmra.mrb[28].mxu1 %vm278_vm1, %v242_v43 }
  0x55   : > { %1686 = vmatprep.mubr.msk.f32.mxu0 %vm2055_vm0, %v2056_v6  ;;  %1794 = vmatprep.mubr.msk.f32.mxu1 %vm2055_vm0, %v2056_v6 }
  0x58   : > { %1687 = vmatmul.mubr.msk.f32.gmra.mrb[30].mxu0 %vm278_vm1, %v207_v44  ;;  %1795 = vmatmul.mubr.msk.f32.gmra.mrb[30].mxu1 %vm278_vm1, %v243_v45 }
  0x59   : > { %1689 = vmatprep.mubr.msk.f32.mxu0 %vm2055_vm0, %v2056_v6  ;;  %1797 = vmatprep.mubr.msk.f32.mxu1 %vm2055_vm0, %v2056_v6 }
  0x5c   : > { %1690 = vmatmul.mubr.msk.f32.gmra.mrb[32].mxu0 %vm278_vm1, %v208_v46  ;;  %1798 = vmatmul.mubr.msk.f32.gmra.mrb[32].mxu1 %vm278_vm1, %v244_v47 }
  0x5d   : > { %1692 = vmatprep.mubr.msk.f32.mxu0 %vm2055_vm0, %v2056_v6  ;;  %1800 = vmatprep.mubr.msk.f32.mxu1 %vm2055_vm0, %v2056_v6 }
  0x60   : > { %1693 = vmatmul.mubr.msk.f32.gmra.mrb[34].mxu0 %vm278_vm1, %v209_v48  ;;  %1801 = vmatmul.mubr.msk.f32.gmra.mrb[34].mxu1 %vm278_vm1, %v245_v49 }
  0x61   : > { %1695 = vmatprep.mubr.msk.f32.mxu0 %vm2055_vm0, %v2056_v6  ;;  %1803 = vmatprep.mubr.msk.f32.mxu1 %vm2055_vm0, %v2056_v6 }
  0x64   : > { %1696 = vmatmul.mubr.msk.f32.gmra.mrb[36].mxu0 %vm278_vm1, %v210_v50  ;;  %1804 = vmatmul.mubr.msk.f32.gmra.mrb[36].mxu1 %vm278_vm1, %v246_v51 }
  0x65   : > { %1698 = vmatprep.mubr.msk.f32.mxu0 %vm2055_vm0, %v2056_v6  ;;  %1806 = vmatprep.mubr.msk.f32.mxu1 %vm2055_vm0, %v2056_v6 }
  0x68   : > { %1699 = vmatmul.mubr.msk.f32.gmra.mrb[38].mxu0 %vm278_vm1, %v211_v52  ;;  %1807 = vmatmul.mubr.msk.f32.gmra.mrb[38].mxu1 %vm278_vm1, %v247_v53 }
  0x69   : > { %1701 = vmatprep.mubr.msk.f32.mxu0 %vm2055_vm0, %v2056_v6  ;;  %1809 = vmatprep.mubr.msk.f32.mxu1 %vm2055_vm0, %v2056_v6 }
  0x6c   : > { %1702 = vmatmul.mubr.msk.f32.gmra.mrb[40].mxu0 %vm278_vm1, %v212_v54  ;;  %1810 = vmatmul.mubr.msk.f32.gmra.mrb[40].mxu1 %vm278_vm1, %v248_v55 }
  0x6d   : > { %1704 = vmatprep.mubr.msk.f32.mxu0 %vm2055_vm0, %v2056_v6  ;;  %1812 = vmatprep.mubr.msk.f32.mxu1 %vm2055_vm0, %v2056_v6 }
  0x70   : > { %1705 = vmatmul.mubr.msk.f32.gmra.mrb[42].mxu0 %vm278_vm1, %v213_v56  ;;  %1813 = vmatmul.mubr.msk.f32.gmra.mrb[42].mxu1 %vm278_vm1, %v249_v57 }
  0x71   : > { %1707 = vmatprep.mubr.msk.f32.mxu0 %vm2055_vm0, %v2056_v6  ;;  %1815 = vmatprep.mubr.msk.f32.mxu1 %vm2055_vm0, %v2056_v6 }
  0x74   : > { %1708 = vmatmul.mubr.msk.f32.gmra.mrb[44].mxu0 %vm278_vm1, %v214_v58  ;;  %1816 = vmatmul.mubr.msk.f32.gmra.mrb[44].mxu1 %vm278_vm1, %v250_v59 }
  0x75   : > { %1710 = vmatprep.mubr.msk.f32.mxu0 %vm2055_vm0, %v2056_v6  ;;  %1818 = vmatprep.mubr.msk.f32.mxu1 %vm2055_vm0, %v2056_v6 }
  0x78   : > { %1711 = vmatmul.mubr.msk.f32.gmra.mrb[46].mxu0 %vm278_vm1, %v215_v60  ;;  %1819 = vmatmul.mubr.msk.f32.gmra.mrb[46].mxu1 %vm278_vm1, %v251_v61 }
  0x79   : > { %1713 = vmatprep.mubr.msk.f32.mxu0 %vm2055_vm0, %v2056_v6  ;;  %1821 = vmatprep.mubr.msk.f32.mxu1 %vm2055_vm0, %v2056_v6 }
  0x7c   : > { %1714 = vmatmul.mubr.msk.f32.gmra.mrb[48].mxu0 %vm278_vm1, %v216_v62  ;;  %1822 = vmatmul.mubr.msk.f32.gmra.mrb[48].mxu1 %vm278_vm1, %v252_v63 }
  0x7d   : > { %1716 = vmatprep.mubr.msk.f32.mxu0 %vm2055_vm0, %v2056_v6  ;;  %1824 = vmatprep.mubr.msk.f32.mxu1 %vm2055_vm0, %v2056_v6 }
  0x80   : > { %1717 = vmatmul.mubr.msk.f32.gmra.mrb[50].mxu0 %vm278_vm1, %v217_v0  ;;  %1825 = vmatmul.mubr.msk.f32.gmra.mrb[50].mxu1 %vm278_vm1, %v253_v1 }
  0x81   : > { %1719 = vmatprep.mubr.msk.f32.mxu0 %vm2055_vm0, %v2056_v6  ;;  %1827 = vmatprep.mubr.msk.f32.mxu1 %vm2055_vm0, %v2056_v6 }
  0x84   : > { %1720 = vmatmul.mubr.msk.f32.gmra.mrb[52].mxu0 %vm278_vm1, %v218_v2  ;;  %1828 = vmatmul.mubr.msk.f32.gmra.mrb[52].mxu1 %vm278_vm1, %v254_v3 }
  0x85   : > { %1722 = vmatprep.mubr.msk.f32.mxu0 %vm2055_vm0, %v2056_v6  ;;  %1830 = vmatprep.mubr.msk.f32.mxu1 %vm2055_vm0, %v2056_v6 }
  0x88   : > { %1723 = vmatmul.mubr.msk.f32.gmra.mrb[54].mxu0 %vm278_vm1, %v219_v4  ;;  %1831 = vmatmul.mubr.msk.f32.gmra.mrb[54].mxu1 %vm278_vm1, %v255_v5 }
  0x89   : > { %1725 = vmatprep.mubr.msk.f32.mxu0 %vm2055_vm0, %v2056_v6  ;;  %1833 = vmatprep.mubr.msk.f32.mxu1 %vm2055_vm0, %v2056_v6 }
  0x8c   : > { %1726 = vmatmul.mubr.msk.f32.gmra.mrb[56].mxu0 %vm278_vm1, %v220_v7  ;;  %1834 = vmatmul.mubr.msk.f32.gmra.mrb[56].mxu1 %vm278_vm1, %v256_v8 }
  0x8d   : > { %1728 = vmatprep.mubr.msk.f32.mxu0 %vm2055_vm0, %v2056_v6  ;;  %1836 = vmatprep.mubr.msk.f32.mxu1 %vm2055_vm0, %v2056_v6 }
  0x90   : > { %1729 = vmatmul.mubr.msk.f32.gmra.mrb[58].mxu0 %vm278_vm1, %v221_v9  ;;  %1837 = vmatmul.mubr.msk.f32.gmra.mrb[58].mxu1 %vm278_vm1, %v257_v10 }
  0x91   : > { %1731 = vmatprep.mubr.msk.f32.mxu0 %vm2055_vm0, %v2056_v6  ;;  %1839 = vmatprep.mubr.msk.f32.mxu1 %vm2055_vm0, %v2056_v6 }
  0x94   : > { %1732 = vmatmul.mubr.msk.f32.gmra.mrb[60].mxu0 %vm278_vm1, %v222_v11  ;;  %1840 = vmatmul.mubr.msk.f32.gmra.mrb[60].mxu1 %vm278_vm1, %v258_v12 }
  0x95   : > { %1734 = vmatprep.mubr.msk.f32.mxu0 %vm2055_vm0, %v2056_v6  ;;  %1842 = vmatprep.mubr.msk.f32.mxu1 %vm2055_vm0, %v2056_v6 }
  0x98   : > { %1735 = vmatmul.mubr.msk.f32.gmra.mrb[62].mxu0 %vm278_vm1, %v223_v13  ;;  %1843 = vmatmul.mubr.msk.f32.gmra.mrb[62].mxu1 %vm278_vm1, %v259_v14 }
  0x99   : > { %1737 = vmatprep.mubr.msk.f32.mxu0 %vm2055_vm0, %v2056_v6  ;;  %1845 = vmatprep.mubr.msk.f32.mxu1 %vm2055_vm0, %v2056_v6 }
  0x9c   : > { %1738 = vmatmul.mubr.msk.f32.gmra.mrb[64].mxu0 %vm278_vm1, %v224_v15  ;;  %1846 = vmatmul.mubr.msk.f32.gmra.mrb[64].mxu1 %vm278_vm1, %v260_v16 }
  0x9d   : > { %1740 = vmatprep.mubr.msk.f32.mxu0 %vm2055_vm0, %v2056_v6  ;;  %1848 = vmatprep.mubr.msk.f32.mxu1 %vm2055_vm0, %v2056_v6 }
  0xa0   : > { %1741 = vmatmul.mubr.msk.f32.gmra.mrb[66].mxu0 %vm278_vm1, %v225_v17  ;;  %1849 = vmatmul.mubr.msk.f32.gmra.mrb[66].mxu1 %vm278_vm1, %v261_v18 }
  0xa1   : > { %1743 = vmatprep.mubr.msk.f32.mxu0 %vm2055_vm0, %v2056_v6  ;;  %1851 = vmatprep.mubr.msk.f32.mxu1 %vm2055_vm0, %v2056_v6 }
  0xa4   : > { %1744 = vmatmul.mubr.msk.f32.gmra.mrb[68].mxu0 %vm278_vm1, %v226_v19  ;;  %1852 = vmatmul.mubr.msk.f32.gmra.mrb[68].mxu1 %vm278_vm1, %v262_v20 }
  0xa5   : > { %1746 = vmatprep.mubr.msk.f32.mxu0 %vm2055_vm0, %v2056_v6 }
  0xa8   : > { %1747 = vmatmul.mubr.msk.f32.gmra.mrb[70].mxu0 %vm278_vm1, %v227_v21 }
  0xef   : > { %v558_v23 = vpop.f32.mrb[0].mxu0  ;;  %v738_v24 = vpop.f32.mrb[0].mxu1 }
  0xf0   : > { %v559_v25 = vadd.f32 %v2428_v22, %v558_v23  ;;  %v1643_v26 = vpop.f32.mrb[1].mxu0  ;;  %v739_v27 = vadd.f32 %v2428_v22, %v738_v24  ;;  %v1751_v28 = vpop.f32.mrb[1].mxu1 }
  0xf2   : > { %913 = vst.msk [vmem:[%s2432_s26] sm:$0xff] %vm912_vm2, %v559_v25  ;;  %949 = vst.msk [vmem:[%s2432_s26 + $0x120] sm:$0xff] %vm912_vm2, %v739_v27 }
  0xf3   : > { %v563_v6 = vpop.f32.mrb[2].mxu0  ;;  %v743_v29 = vpop.f32.mrb[2].mxu1 }
  0xf4   : > { %v564_v30 = vadd.f32 %v2428_v22, %v563_v6  ;;  %v1646_v31 = vpop.f32.mrb[3].mxu0  ;;  %v744_v32 = vadd.f32 %v2428_v22, %v743_v29  ;;  %v1754_v33 = vpop.f32.mrb[3].mxu1 }
  0xf6   : > { %914 = vst.msk [vmem:[%s2432_s26 + $0x8] sm:$0xff] %vm912_vm2, %v564_v30  ;;  %950 = vst.msk [vmem:[%s2432_s26 + $0x128] sm:$0xff] %vm912_vm2, %v744_v32 }
  0xf7   : > { %v568_v34 = vpop.f32.mrb[4].mxu0  ;;  %v748_v35 = vpop.f32.mrb[4].mxu1 }
  0xf8   : > { %v569_v36 = vadd.f32 %v2428_v22, %v568_v34  ;;  %v1649_v37 = vpop.f32.mrb[5].mxu0  ;;  %v749_v38 = vadd.f32 %v2428_v22, %v748_v35  ;;  %v1757_v39 = vpop.f32.mrb[5].mxu1 }
  0xfa   : > { %915 = vst.msk [vmem:[%s2432_s26 + $0x10] sm:$0xff] %vm912_vm2, %v569_v36  ;;  %951 = vst.msk [vmem:[%s2432_s26 + $0x130] sm:$0xff] %vm912_vm2, %v749_v38 }
  0xfb   : > { %v573_v40 = vpop.f32.mrb[6].mxu0  ;;  %v753_v41 = vpop.f32.mrb[6].mxu1 }
  0xfc   : > { %v574_v42 = vadd.f32 %v2428_v22, %v573_v40  ;;  %v1652_v43 = vpop.f32.mrb[7].mxu0  ;;  %v754_v44 = vadd.f32 %v2428_v22, %v753_v41  ;;  %v1760_v45 = vpop.f32.mrb[7].mxu1 }
  0xfe   : > { %916 = vst.msk [vmem:[%s2432_s26 + $0x18] sm:$0xff] %vm912_vm2, %v574_v42  ;;  %952 = vst.msk [vmem:[%s2432_s26 + $0x138] sm:$0xff] %vm912_vm2, %v754_v44 }
  0xff   : > { %v578_v46 = vpop.f32.mrb[8].mxu0  ;;  %v758_v47 = vpop.f32.mrb[8].mxu1 }
 0x100   : > { %v579_v48 = vadd.f32 %v2428_v22, %v578_v46  ;;  %v1655_v49 = vpop.f32.mrb[9].mxu0  ;;  %v759_v50 = vadd.f32 %v2428_v22, %v758_v47  ;;  %v1763_v51 = vpop.f32.mrb[9].mxu1 }
 0x102   : > { %917 = vst.msk [vmem:[%s2432_s26 + $0x20] sm:$0xff] %vm912_vm2, %v579_v48  ;;  %953 = vst.msk [vmem:[%s2432_s26 + $0x140] sm:$0xff] %vm912_vm2, %v759_v50 }
 0x103   : > { %v583_v52 = vpop.f32.mrb[10].mxu0  ;;  %v763_v53 = vpop.f32.mrb[10].mxu1 }
 0x104   : > { %v584_v54 = vadd.f32 %v2428_v22, %v583_v52  ;;  %v1658_v55 = vpop.f32.mrb[11].mxu0  ;;  %v764_v56 = vadd.f32 %v2428_v22, %v763_v53  ;;  %v1766_v57 = vpop.f32.mrb[11].mxu1 }
 0x106   : > { %918 = vst.msk [vmem:[%s2432_s26 + $0x28] sm:$0xff] %vm912_vm2, %v584_v54  ;;  %954 = vst.msk [vmem:[%s2432_s26 + $0x148] sm:$0xff] %vm912_vm2, %v764_v56 }
 0x107   : > { %v588_v58 = vpop.f32.mrb[12].mxu0  ;;  %v768_v59 = vpop.f32.mrb[12].mxu1 }
 0x108   : > { %v589_v60 = vadd.f32 %v2428_v22, %v588_v58  ;;  %v1661_v61 = vpop.f32.mrb[13].mxu0  ;;  %v769_v62 = vadd.f32 %v2428_v22, %v768_v59  ;;  %v1769_v63 = vpop.f32.mrb[13].mxu1 }
 0x10a   : > { %919 = vst.msk [vmem:[%s2432_s26 + $0x30] sm:$0xff] %vm912_vm2, %v589_v60  ;;  %955 = vst.msk [vmem:[%s2432_s26 + $0x150] sm:$0xff] %vm912_vm2, %v769_v62 }
 0x10b   : > { %v593_v0 = vpop.f32.mrb[14].mxu0  ;;  %v773_v1 = vpop.f32.mrb[14].mxu1 }
 0x10c   : > { %v594_v2 = vadd.f32 %v2428_v22, %v593_v0  ;;  %v1664_v3 = vpop.f32.mrb[15].mxu0  ;;  %v774_v4 = vadd.f32 %v2428_v22, %v773_v1  ;;  %v1772_v5 = vpop.f32.mrb[15].mxu1 }
 0x10e   : > { %920 = vst.msk [vmem:[%s2432_s26 + $0x38] sm:$0xff] %vm912_vm2, %v594_v2  ;;  %956 = vst.msk [vmem:[%s2432_s26 + $0x158] sm:$0xff] %vm912_vm2, %v774_v4 }
 0x10f   : > { %v598_v7 = vpop.f32.mrb[16].mxu0  ;;  %v778_v8 = vpop.f32.mrb[16].mxu1 }
 0x110   : > { %v599_v9 = vadd.f32 %v2428_v22, %v598_v7  ;;  %v1667_v10 = vpop.f32.mrb[17].mxu0  ;;  %v779_v11 = vadd.f32 %v2428_v22, %v778_v8  ;;  %v1775_v12 = vpop.f32.mrb[17].mxu1 }
 0x112   : > { %921 = vst.msk [vmem:[%s2432_s26 + $0x40] sm:$0xff] %vm912_vm2, %v599_v9  ;;  %957 = vst.msk [vmem:[%s2432_s26 + $0x160] sm:$0xff] %vm912_vm2, %v779_v11 }
 0x113   : > { %v603_v13 = vpop.f32.mrb[18].mxu0  ;;  %v783_v14 = vpop.f32.mrb[18].mxu1 }
 0x114   : > { %v604_v15 = vadd.f32 %v2428_v22, %v603_v13  ;;  %v1670_v16 = vpop.f32.mrb[19].mxu0  ;;  %v784_v17 = vadd.f32 %v2428_v22, %v783_v14  ;;  %v1778_v18 = vpop.f32.mrb[19].mxu1 }
 0x116   : > { %922 = vst.msk [vmem:[%s2432_s26 + $0x48] sm:$0xff] %vm912_vm2, %v604_v15  ;;  %958 = vst.msk [vmem:[%s2432_s26 + $0x168] sm:$0xff] %vm912_vm2, %v784_v17 }
 0x117   : > { %v608_v19 = vpop.f32.mrb[20].mxu0  ;;  %v788_v20 = vpop.f32.mrb[20].mxu1 }
 0x118   : > { %v609_v21 = vadd.f32 %v2428_v22, %v608_v19  ;;  %v1673_v23 = vpop.f32.mrb[21].mxu0  ;;  %v789_v24 = vadd.f32 %v2428_v22, %v788_v20  ;;  %v1781_v25 = vpop.f32.mrb[21].mxu1 }
 0x11a   : > { %923 = vst.msk [vmem:[%s2432_s26 + $0x50] sm:$0xff] %vm912_vm2, %v609_v21  ;;  %959 = vst.msk [vmem:[%s2432_s26 + $0x170] sm:$0xff] %vm912_vm2, %v789_v24 }
 0x11b   : > { %v613_v26 = vpop.f32.mrb[22].mxu0  ;;  %v793_v27 = vpop.f32.mrb[22].mxu1 }
 0x11c   : > { %v614_v28 = vadd.f32 %v2428_v22, %v613_v26  ;;  %v1676_v6 = vpop.f32.mrb[23].mxu0  ;;  %v794_v29 = vadd.f32 %v2428_v22, %v793_v27  ;;  %v1784_v30 = vpop.f32.mrb[23].mxu1 }
 0x11e   : > { %924 = vst.msk [vmem:[%s2432_s26 + $0x58] sm:$0xff] %vm912_vm2, %v614_v28  ;;  %960 = vst.msk [vmem:[%s2432_s26 + $0x178] sm:$0xff] %vm912_vm2, %v794_v29 }
 0x11f   : > { %v618_v31 = vpop.f32.mrb[24].mxu0  ;;  %v798_v32 = vpop.f32.mrb[24].mxu1 }
 0x120   : > { %v619_v33 = vadd.f32 %v2428_v22, %v618_v31  ;;  %v1679_v34 = vpop.f32.mrb[25].mxu0  ;;  %v799_v35 = vadd.f32 %v2428_v22, %v798_v32  ;;  %v1787_v36 = vpop.f32.mrb[25].mxu1 }
 0x122   : > { %925 = vst.msk [vmem:[%s2432_s26 + $0x60] sm:$0xff] %vm912_vm2, %v619_v33  ;;  %961 = vst.msk [vmem:[%s2432_s26 + $0x180] sm:$0xff] %vm912_vm2, %v799_v35 }
 0x123   : > { %v623_v37 = vpop.f32.mrb[26].mxu0  ;;  %v803_v38 = vpop.f32.mrb[26].mxu1 }
 0x124   : > { %v624_v39 = vadd.f32 %v2428_v22, %v623_v37  ;;  %v1682_v40 = vpop.f32.mrb[27].mxu0  ;;  %v804_v41 = vadd.f32 %v2428_v22, %v803_v38  ;;  %v1790_v42 = vpop.f32.mrb[27].mxu1 }
 0x126   : > { %926 = vst.msk [vmem:[%s2432_s26 + $0x68] sm:$0xff] %vm912_vm2, %v624_v39  ;;  %962 = vst.msk [vmem:[%s2432_s26 + $0x188] sm:$0xff] %vm912_vm2, %v804_v41 }
 0x127   : > { %v628_v43 = vpop.f32.mrb[28].mxu0  ;;  %v808_v44 = vpop.f32.mrb[28].mxu1 }
 0x128   : > { %v629_v45 = vadd.f32 %v2428_v22, %v628_v43  ;;  %v1685_v46 = vpop.f32.mrb[29].mxu0  ;;  %v809_v47 = vadd.f32 %v2428_v22, %v808_v44  ;;  %v1793_v48 = vpop.f32.mrb[29].mxu1 }
 0x12a   : > { %927 = vst.msk [vmem:[%s2432_s26 + $0x70] sm:$0xff] %vm912_vm2, %v629_v45  ;;  %963 = vst.msk [vmem:[%s2432_s26 + $0x190] sm:$0xff] %vm912_vm2, %v809_v47 }
 0x12b   : > { %v633_v49 = vpop.f32.mrb[30].mxu0  ;;  %v813_v50 = vpop.f32.mrb[30].mxu1 }
 0x12c   : > { %v634_v51 = vadd.f32 %v2428_v22, %v633_v49  ;;  %v1688_v52 = vpop.f32.mrb[31].mxu0  ;;  %v814_v53 = vadd.f32 %v2428_v22, %v813_v50  ;;  %v1796_v54 = vpop.f32.mrb[31].mxu1 }
 0x12e   : > { %928 = vst.msk [vmem:[%s2432_s26 + $0x78] sm:$0xff] %vm912_vm2, %v634_v51  ;;  %964 = vst.msk [vmem:[%s2432_s26 + $0x198] sm:$0xff] %vm912_vm2, %v814_v53 }
 0x12f   : > { %v638_v55 = vpop.f32.mrb[32].mxu0  ;;  %v818_v56 = vpop.f32.mrb[32].mxu1 }
 0x130   : > { %v639_v57 = vadd.f32 %v2428_v22, %v638_v55  ;;  %v1691_v58 = vpop.f32.mrb[33].mxu0  ;;  %v819_v59 = vadd.f32 %v2428_v22, %v818_v56  ;;  %v1799_v60 = vpop.f32.mrb[33].mxu1 }
 0x132   : > { %929 = vst.msk [vmem:[%s2432_s26 + $0x80] sm:$0xff] %vm912_vm2, %v639_v57  ;;  %965 = vst.msk [vmem:[%s2432_s26 + $0x1a0] sm:$0xff] %vm912_vm2, %v819_v59 }
 0x133   : > { %v643_v61 = vpop.f32.mrb[34].mxu0  ;;  %v823_v62 = vpop.f32.mrb[34].mxu1 }
 0x134   : > { %v644_v63 = vadd.f32 %v2428_v22, %v643_v61  ;;  %v1694_v0 = vpop.f32.mrb[35].mxu0  ;;  %v824_v1 = vadd.f32 %v2428_v22, %v823_v62  ;;  %v1802_v2 = vpop.f32.mrb[35].mxu1 }
 0x136   : > { %930 = vst.msk [vmem:[%s2432_s26 + $0x88] sm:$0xff] %vm912_vm2, %v644_v63  ;;  %966 = vst.msk [vmem:[%s2432_s26 + $0x1a8] sm:$0xff] %vm912_vm2, %v824_v1 }
 0x137   : > { %v648_v3 = vpop.f32.mrb[36].mxu0  ;;  %v828_v4 = vpop.f32.mrb[36].mxu1 }
 0x138   : > { %v649_v5 = vadd.f32 %v2428_v22, %v648_v3  ;;  %v1697_v7 = vpop.f32.mrb[37].mxu0  ;;  %v829_v8 = vadd.f32 %v2428_v22, %v828_v4  ;;  %v1805_v9 = vpop.f32.mrb[37].mxu1 }
 0x13a   : > { %931 = vst.msk [vmem:[%s2432_s26 + $0x90] sm:$0xff] %vm912_vm2, %v649_v5  ;;  %967 = vst.msk [vmem:[%s2432_s26 + $0x1b0] sm:$0xff] %vm912_vm2, %v829_v8 }
 0x13b   : > { %v653_v10 = vpop.f32.mrb[38].mxu0  ;;  %v833_v11 = vpop.f32.mrb[38].mxu1 }
 0x13c   : > { %v654_v12 = vadd.f32 %v2428_v22, %v653_v10  ;;  %v1700_v13 = vpop.f32.mrb[39].mxu0  ;;  %v834_v14 = vadd.f32 %v2428_v22, %v833_v11  ;;  %v1808_v15 = vpop.f32.mrb[39].mxu1 }
 0x13e   : > { %932 = vst.msk [vmem:[%s2432_s26 + $0x98] sm:$0xff] %vm912_vm2, %v654_v12  ;;  %968 = vst.msk [vmem:[%s2432_s26 + $0x1b8] sm:$0xff] %vm912_vm2, %v834_v14 }
 0x13f   : > { %v658_v16 = vpop.f32.mrb[40].mxu0  ;;  %v838_v17 = vpop.f32.mrb[40].mxu1 }
 0x140   : > { %v659_v18 = vadd.f32 %v2428_v22, %v658_v16  ;;  %v1703_v19 = vpop.f32.mrb[41].mxu0  ;;  %v839_v20 = vadd.f32 %v2428_v22, %v838_v17  ;;  %v1811_v21 = vpop.f32.mrb[41].mxu1 }
 0x142   : > { %933 = vst.msk [vmem:[%s2432_s26 + $0xa0] sm:$0xff] %vm912_vm2, %v659_v18  ;;  %969 = vst.msk [vmem:[%s2432_s26 + $0x1c0] sm:$0xff] %vm912_vm2, %v839_v20 }
 0x143   : > { %v663_v23 = vpop.f32.mrb[42].mxu0  ;;  %v843_v24 = vpop.f32.mrb[42].mxu1 }
 0x144   : > { %v664_v25 = vadd.f32 %v2428_v22, %v663_v23  ;;  %v1706_v26 = vpop.f32.mrb[43].mxu0  ;;  %v844_v27 = vadd.f32 %v2428_v22, %v843_v24  ;;  %v1814_v28 = vpop.f32.mrb[43].mxu1 }
 0x146   : > { %934 = vst.msk [vmem:[%s2432_s26 + $0xa8] sm:$0xff] %vm912_vm2, %v664_v25  ;;  %970 = vst.msk [vmem:[%s2432_s26 + $0x1c8] sm:$0xff] %vm912_vm2, %v844_v27 }
 0x147   : > { %v668_v6 = vpop.f32.mrb[44].mxu0  ;;  %v848_v29 = vpop.f32.mrb[44].mxu1 }
 0x148   : > { %v669_v30 = vadd.f32 %v2428_v22, %v668_v6  ;;  %v1709_v31 = vpop.f32.mrb[45].mxu0  ;;  %v849_v32 = vadd.f32 %v2428_v22, %v848_v29  ;;  %v1817_v33 = vpop.f32.mrb[45].mxu1 }
 0x14a   : > { %935 = vst.msk [vmem:[%s2432_s26 + $0xb0] sm:$0xff] %vm912_vm2, %v669_v30  ;;  %971 = vst.msk [vmem:[%s2432_s26 + $0x1d0] sm:$0xff] %vm912_vm2, %v849_v32 }
 0x14b   : > { %v673_v34 = vpop.f32.mrb[46].mxu0  ;;  %v853_v35 = vpop.f32.mrb[46].mxu1 }
 0x14c   : > { %v674_v36 = vadd.f32 %v2428_v22, %v673_v34  ;;  %v1712_v37 = vpop.f32.mrb[47].mxu0  ;;  %v854_v38 = vadd.f32 %v2428_v22, %v853_v35  ;;  %v1820_v39 = vpop.f32.mrb[47].mxu1 }
 0x14e   : > { %936 = vst.msk [vmem:[%s2432_s26 + $0xb8] sm:$0xff] %vm912_vm2, %v674_v36  ;;  %972 = vst.msk [vmem:[%s2432_s26 + $0x1d8] sm:$0xff] %vm912_vm2, %v854_v38 }
 0x14f   : > { %v678_v40 = vpop.f32.mrb[48].mxu0  ;;  %v858_v41 = vpop.f32.mrb[48].mxu1 }
 0x150   : > { %v679_v42 = vadd.f32 %v2428_v22, %v678_v40  ;;  %v1715_v43 = vpop.f32.mrb[49].mxu0  ;;  %v859_v44 = vadd.f32 %v2428_v22, %v858_v41  ;;  %v1823_v45 = vpop.f32.mrb[49].mxu1 }
 0x152   : > { %937 = vst.msk [vmem:[%s2432_s26 + $0xc0] sm:$0xff] %vm912_vm2, %v679_v42  ;;  %973 = vst.msk [vmem:[%s2432_s26 + $0x1e0] sm:$0xff] %vm912_vm2, %v859_v44 }
 0x153   : > { %v683_v46 = vpop.f32.mrb[50].mxu0  ;;  %v863_v47 = vpop.f32.mrb[50].mxu1 }
 0x154   : > { %v684_v48 = vadd.f32 %v2428_v22, %v683_v46  ;;  %v1718_v49 = vpop.f32.mrb[51].mxu0  ;;  %v864_v50 = vadd.f32 %v2428_v22, %v863_v47  ;;  %v1826_v51 = vpop.f32.mrb[51].mxu1 }
 0x156   : > { %938 = vst.msk [vmem:[%s2432_s26 + $0xc8] sm:$0xff] %vm912_vm2, %v684_v48  ;;  %974 = vst.msk [vmem:[%s2432_s26 + $0x1e8] sm:$0xff] %vm912_vm2, %v864_v50 }
 0x157   : > { %v688_v52 = vpop.f32.mrb[52].mxu0  ;;  %v868_v53 = vpop.f32.mrb[52].mxu1 }
 0x158   : > { %v689_v54 = vadd.f32 %v2428_v22, %v688_v52  ;;  %v1721_v55 = vpop.f32.mrb[53].mxu0  ;;  %v869_v56 = vadd.f32 %v2428_v22, %v868_v53  ;;  %v1829_v57 = vpop.f32.mrb[53].mxu1 }
 0x15a   : > { %939 = vst.msk [vmem:[%s2432_s26 + $0xd0] sm:$0xff] %vm912_vm2, %v689_v54  ;;  %975 = vst.msk [vmem:[%s2432_s26 + $0x1f0] sm:$0xff] %vm912_vm2, %v869_v56 }
 0x15b   : > { %v693_v58 = vpop.f32.mrb[54].mxu0  ;;  %v873_v59 = vpop.f32.mrb[54].mxu1 }
 0x15c   : > { %v694_v60 = vadd.f32 %v2428_v22, %v693_v58  ;;  %v1724_v61 = vpop.f32.mrb[55].mxu0  ;;  %v874_v62 = vadd.f32 %v2428_v22, %v873_v59  ;;  %v1832_v63 = vpop.f32.mrb[55].mxu1 }
 0x15e   : > { %940 = vst.msk [vmem:[%s2432_s26 + $0xd8] sm:$0xff] %vm912_vm2, %v694_v60  ;;  %976 = vst.msk [vmem:[%s2432_s26 + $0x1f8] sm:$0xff] %vm912_vm2, %v874_v62 }
 0x15f   : > { %v698_v0 = vpop.f32.mrb[56].mxu0  ;;  %v878_v1 = vpop.f32.mrb[56].mxu1 }
 0x160   : > { %v699_v2 = vadd.f32 %v2428_v22, %v698_v0  ;;  %v1727_v3 = vpop.f32.mrb[57].mxu0  ;;  %v879_v4 = vadd.f32 %v2428_v22, %v878_v1  ;;  %v1835_v5 = vpop.f32.mrb[57].mxu1 }
 0x162   : > { %941 = vst.msk [vmem:[%s2432_s26 + $0xe0] sm:$0xff] %vm912_vm2, %v699_v2  ;;  %977 = vst.msk [vmem:[%s2432_s26 + $0x200] sm:$0xff] %vm912_vm2, %v879_v4 }
 0x163   : > { %v703_v7 = vpop.f32.mrb[58].mxu0  ;;  %v883_v8 = vpop.f32.mrb[58].mxu1 }
 0x164   : > { %v704_v9 = vadd.f32 %v2428_v22, %v703_v7  ;;  %v1730_v10 = vpop.f32.mrb[59].mxu0  ;;  %v884_v11 = vadd.f32 %v2428_v22, %v883_v8  ;;  %v1838_v12 = vpop.f32.mrb[59].mxu1 }
 0x166   : > { %942 = vst.msk [vmem:[%s2432_s26 + $0xe8] sm:$0xff] %vm912_vm2, %v704_v9  ;;  %978 = vst.msk [vmem:[%s2432_s26 + $0x208] sm:$0xff] %vm912_vm2, %v884_v11 }
 0x167   : > { %v708_v13 = vpop.f32.mrb[60].mxu0  ;;  %v888_v14 = vpop.f32.mrb[60].mxu1 }
 0x168   : > { %v709_v15 = vadd.f32 %v2428_v22, %v708_v13  ;;  %v1733_v16 = vpop.f32.mrb[61].mxu0  ;;  %v889_v17 = vadd.f32 %v2428_v22, %v888_v14  ;;  %v1841_v18 = vpop.f32.mrb[61].mxu1 }
 0x16a   : > { %943 = vst.msk [vmem:[%s2432_s26 + $0xf0] sm:$0xff] %vm912_vm2, %v709_v15  ;;  %979 = vst.msk [vmem:[%s2432_s26 + $0x210] sm:$0xff] %vm912_vm2, %v889_v17 }
 0x16b   : > { %v713_v19 = vpop.f32.mrb[62].mxu0  ;;  %v893_v20 = vpop.f32.mrb[62].mxu1 }
 0x16c   : > { %v714_v21 = vadd.f32 %v2428_v22, %v713_v19  ;;  %v1736_v23 = vpop.f32.mrb[63].mxu0  ;;  %v894_v24 = vadd.f32 %v2428_v22, %v893_v20  ;;  %v1844_v25 = vpop.f32.mrb[63].mxu1 }
 0x16e   : > { %944 = vst.msk [vmem:[%s2432_s26 + $0xf8] sm:$0xff] %vm912_vm2, %v714_v21  ;;  %980 = vst.msk [vmem:[%s2432_s26 + $0x218] sm:$0xff] %vm912_vm2, %v894_v24 }
 0x16f   : > { %v718_v26 = vpop.f32.mrb[64].mxu0  ;;  %v898_v27 = vpop.f32.mrb[64].mxu1 }
 0x170   : > { %v719_v28 = vadd.f32 %v2428_v22, %v718_v26  ;;  %v1739_v6 = vpop.f32.mrb[65].mxu0  ;;  %v899_v29 = vadd.f32 %v2428_v22, %v898_v27  ;;  %v1847_v30 = vpop.f32.mrb[65].mxu1 }
 0x172   : > { %945 = vst.msk [vmem:[%s2432_s26 + $0x100] sm:$0xff] %vm912_vm2, %v719_v28  ;;  %981 = vst.msk [vmem:[%s2432_s26 + $0x220] sm:$0xff] %vm912_vm2, %v899_v29 }
 0x173   : > { %v723_v31 = vpop.f32.mrb[66].mxu0  ;;  %v903_v32 = vpop.f32.mrb[66].mxu1 }
 0x174   : > { %v724_v33 = vadd.f32 %v2428_v22, %v723_v31  ;;  %v1742_v34 = vpop.f32.mrb[67].mxu0  ;;  %v904_v35 = vadd.f32 %v2428_v22, %v903_v32  ;;  %v1850_v36 = vpop.f32.mrb[67].mxu1 }
 0x176   : > { %946 = vst.msk [vmem:[%s2432_s26 + $0x108] sm:$0xff] %vm912_vm2, %v724_v33  ;;  %982 = vst.msk [vmem:[%s2432_s26 + $0x228] sm:$0xff] %vm912_vm2, %v904_v35 }
 0x177   : > { %v728_v37 = vpop.f32.mrb[68].mxu0  ;;  %v908_v38 = vpop.f32.mrb[68].mxu1 }
 0x178   : > { %v729_v39 = vadd.f32 %v2428_v22, %v728_v37  ;;  %v1745_v40 = vpop.f32.mrb[69].mxu0  ;;  %v909_v41 = vadd.f32 %v2428_v22, %v908_v38  ;;  %v1853_v42 = vpop.f32.mrb[69].mxu1  ;;  %990 = sbr.rel (!%p2102_p4) target bundleno = 455 (0x1c7), region = 36 }
 0x17a   : > { %947 = vst.msk [vmem:[%s2432_s26 + $0x110] sm:$0xff] %vm912_vm2, %v729_v39  ;;  %983 = vst.msk [vmem:[%s2432_s26 + $0x230] sm:$0xff] %vm912_vm2, %v909_v41 }
 0x17b   : > { %v733_v43 = vpop.f32.mrb[70].mxu0 }
 0x17c   : > { %v734_v44 = vadd.f32 %v2428_v22, %v733_v43  ;;  %v1748_v45 = vpop.f32.mrb[71].mxu0 }
 0x17e   : > { %948 = vst.msk [vmem:[%s2432_s26 + $0x118] sm:$0xff] %vm912_vm2, %v734_v44 }
 0x17f   : > { %s2865_s12 = smov (!%p993_p8, %s992_s12), 71 }
 0x180   : > { %s1528_s5 = sshll.u32 %s2865_s12, 7 }
 0x181   : > { %p1531_p9 = scmp.eq.s32.totalorder %s1528_s5, 0 }
 0x182   : > { %s2658_s6 = sshrl.u32 (!%p1531_p9), %s2865_s12, 6 }
 0x183   : > { %1001 = sbr.rel (%p1531_p9) target bundleno = 455 (0x1c7), region = 40  ;;  %p1532_p10 = scmp.le.s32.totalorder (!%p1531_p9), %s2658_s6, 0 }
 0x18a   : > { %1407 = sbr.rel (%p1532_p10) target bundleno = 434 (0x1b2), region = 116  ;;  %s2856_s15 = smov (!%p1532_p10), %s2652_s4 }
 0x18b   : > { %s2857_s20 = smov (!%p1532_p10), %s2432_s26  ;;  %s2667_s29 = smov (!%p1532_p10), 0  }
 0x18c   : > { %s2669_s7 = smov (!%p1532_p10), 0  }
 0x191 LB: >> { %v1189_v22 = vld [vmem:[%s2028_s20] sm:$0xff]  ;;  %v1191_v46 = vld [vmem:[%s2028_s20 + $0x8] sm:$0xff]  ;;  %v1193_v47 = vld [vmem:[%s2028_s20 + $0x10] sm:$0xff]  ;;  %s1317_s8 = sadd.s32 1, %s2032_s29  ;;  %s1183_s7 = sadd.s32 1, %s2036_s7   ;;  %s2036_s7 = sphi %s2669_s7, %s1183_s7   ;;  %s2032_s29 = sphi %s2667_s29, %s2860_s29   ;;  %s2028_s20 = sphi %s2857_s20, %s2859_s20   ;;  %s2024_s15 = sphi %s2856_s15, %s2858_s15  }
 0x192   : >> { %1190 = vst [vmem:[%s2024_s15] sm:$0xff] %v1189_v22  ;;  %1192 = vst [vmem:[%s2024_s15 + $0x8] sm:$0xff] %v1191_v46  ;;  %v1195_v48 = vld [vmem:[%s2028_s20 + $0x18] sm:$0xff]  ;;  %v1197_v49 = vld [vmem:[%s2028_s20 + $0x20] sm:$0xff]  ;;  %p1318_p11 = scmp.ge.s32.totalorder %s1317_s8, %s2658_s6  ;;  %p1182_p12 = scmp.ge.s32.totalorder %s1183_s7, %s2658_s6 }
 0x193   : >> { %1194 = vst [vmem:[%s2024_s15 + $0x10] sm:$0xff] %v1193_v47  ;;  %v1199_v50 = vld [vmem:[%s2028_s20 + $0x28] sm:$0xff]  ;;  %1196 = vst [vmem:[%s2024_s15 + $0x18] sm:$0xff] %v1195_v48  ;;  %v1201_v51 = vld [vmem:[%s2028_s20 + $0x30] sm:$0xff] }
 0x194   : >> { %1198 = vst [vmem:[%s2024_s15 + $0x20] sm:$0xff] %v1197_v49  ;;  %1200 = vst [vmem:[%s2024_s15 + $0x28] sm:$0xff] %v1199_v50  ;;  %v1203_v52 = vld [vmem:[%s2028_s20 + $0x38] sm:$0xff]  ;;  %v1205_v53 = vld [vmem:[%s2028_s20 + $0x40] sm:$0xff]  ;;  %s2867_s8 = smov (%p1318_p11, %s1317_s8), 0 }
 0x195   : >> { %1202 = vst [vmem:[%s2024_s15 + $0x30] sm:$0xff] %v1201_v51  ;;  %1204 = vst [vmem:[%s2024_s15 + $0x38] sm:$0xff] %v1203_v52  ;;  %v1207_v54 = vld [vmem:[%s2028_s20 + $0x48] sm:$0xff]  ;;  %v1209_v55 = vld [vmem:[%s2028_s20 + $0x50] sm:$0xff]  ;;  %s1533_s9 = sshll.u32 %s2867_s8, 9  ;;  %s2860_s29 = smov %s2867_s8 }
 0x196   : >> { %1206 = vst [vmem:[%s2024_s15 + $0x40] sm:$0xff] %v1205_v53  ;;  %v1211_v56 = vld [vmem:[%s2028_s20 + $0x58] sm:$0xff]  ;;  %1208 = vst [vmem:[%s2024_s15 + $0x48] sm:$0xff] %v1207_v54  ;;  %v1213_v57 = vld [vmem:[%s2028_s20 + $0x60] sm:$0xff]  ;;  %s2725_s10 = scalar_lea.vmem %s2432_s26, %s1533_s9 [#allocation2]   ;;  %s2728_s11 = scalar_lea.vmem %s2652_s4, %s1533_s9  }
 0x197   : >> { %1210 = vst [vmem:[%s2024_s15 + $0x50] sm:$0xff] %v1209_v55  ;;  %1212 = vst [vmem:[%s2024_s15 + $0x58] sm:$0xff] %v1211_v56  ;;  %v1215_v58 = vld [vmem:[%s2028_s20 + $0x68] sm:$0xff]  ;;  %v1217_v59 = vld [vmem:[%s2028_s20 + $0x70] sm:$0xff] }
 0x198   : >> { %1214 = vst [vmem:[%s2024_s15 + $0x60] sm:$0xff] %v1213_v57  ;;  %1216 = vst [vmem:[%s2024_s15 + $0x68] sm:$0xff] %v1215_v58  ;;  %v1219_v60 = vld [vmem:[%s2028_s20 + $0x78] sm:$0xff]  ;;  %v1221_v61 = vld [vmem:[%s2028_s20 + $0x80] sm:$0xff] }
 0x199   : >> { %1218 = vst [vmem:[%s2024_s15 + $0x70] sm:$0xff] %v1217_v59  ;;  %v1223_v62 = vld [vmem:[%s2028_s20 + $0x88] sm:$0xff]  ;;  %1220 = vst [vmem:[%s2024_s15 + $0x78] sm:$0xff] %v1219_v60  ;;  %v1225_v63 = vld [vmem:[%s2028_s20 + $0x90] sm:$0xff] }
 0x19a   : >> { %1222 = vst [vmem:[%s2024_s15 + $0x80] sm:$0xff] %v1221_v61  ;;  %1224 = vst [vmem:[%s2024_s15 + $0x88] sm:$0xff] %v1223_v62  ;;  %v1227_v0 = vld [vmem:[%s2028_s20 + $0x98] sm:$0xff]  ;;  %v1229_v1 = vld [vmem:[%s2028_s20 + $0xa0] sm:$0xff] }
 0x19b   : >> { %1226 = vst [vmem:[%s2024_s15 + $0x90] sm:$0xff] %v1225_v63  ;;  %1228 = vst [vmem:[%s2024_s15 + $0x98] sm:$0xff] %v1227_v0  ;;  %v1231_v2 = vld [vmem:[%s2028_s20 + $0xa8] sm:$0xff]  ;;  %v1233_v3 = vld [vmem:[%s2028_s20 + $0xb0] sm:$0xff] }
 0x19c   : >> { %1230 = vst [vmem:[%s2024_s15 + $0xa0] sm:$0xff] %v1229_v1  ;;  %v1235_v4 = vld [vmem:[%s2028_s20 + $0xb8] sm:$0xff]  ;;  %1232 = vst [vmem:[%s2024_s15 + $0xa8] sm:$0xff] %v1231_v2  ;;  %v1237_v5 = vld [vmem:[%s2028_s20 + $0xc0] sm:$0xff] }
 0x19d   : >> { %1234 = vst [vmem:[%s2024_s15 + $0xb0] sm:$0xff] %v1233_v3  ;;  %1236 = vst [vmem:[%s2024_s15 + $0xb8] sm:$0xff] %v1235_v4  ;;  %v1239_v7 = vld [vmem:[%s2028_s20 + $0xc8] sm:$0xff]  ;;  %v1241_v8 = vld [vmem:[%s2028_s20 + $0xd0] sm:$0xff] }
 0x19e   : >> { %1238 = vst [vmem:[%s2024_s15 + $0xc0] sm:$0xff] %v1237_v5  ;;  %1240 = vst [vmem:[%s2024_s15 + $0xc8] sm:$0xff] %v1239_v7  ;;  %v1243_v9 = vld [vmem:[%s2028_s20 + $0xd8] sm:$0xff]  ;;  %v1245_v10 = vld [vmem:[%s2028_s20 + $0xe0] sm:$0xff] }
 0x19f   : >> { %1242 = vst [vmem:[%s2024_s15 + $0xd0] sm:$0xff] %v1241_v8  ;;  %v1247_v11 = vld [vmem:[%s2028_s20 + $0xe8] sm:$0xff]  ;;  %1244 = vst [vmem:[%s2024_s15 + $0xd8] sm:$0xff] %v1243_v9  ;;  %v1249_v12 = vld [vmem:[%s2028_s20 + $0xf0] sm:$0xff] }
 0x1a0   : >> { %1246 = vst [vmem:[%s2024_s15 + $0xe0] sm:$0xff] %v1245_v10  ;;  %1248 = vst [vmem:[%s2024_s15 + $0xe8] sm:$0xff] %v1247_v11  ;;  %v1251_v13 = vld [vmem:[%s2028_s20 + $0xf8] sm:$0xff]  ;;  %v1253_v14 = vld [vmem:[%s2028_s20 + $0x100] sm:$0xff] }
 0x1a1   : >> { %1250 = vst [vmem:[%s2024_s15 + $0xf0] sm:$0xff] %v1249_v12  ;;  %1252 = vst [vmem:[%s2024_s15 + $0xf8] sm:$0xff] %v1251_v13  ;;  %v1255_v15 = vld [vmem:[%s2028_s20 + $0x108] sm:$0xff]  ;;  %v1257_v16 = vld [vmem:[%s2028_s20 + $0x110] sm:$0xff] }
 0x1a2   : >> { %1254 = vst [vmem:[%s2024_s15 + $0x100] sm:$0xff] %v1253_v14  ;;  %v1259_v17 = vld [vmem:[%s2028_s20 + $0x118] sm:$0xff]  ;;  %1256 = vst [vmem:[%s2024_s15 + $0x108] sm:$0xff] %v1255_v15  ;;  %v1261_v18 = vld [vmem:[%s2028_s20 + $0x120] sm:$0xff] }
 0x1a3   : >> { %1258 = vst [vmem:[%s2024_s15 + $0x110] sm:$0xff] %v1257_v16  ;;  %1260 = vst [vmem:[%s2024_s15 + $0x118] sm:$0xff] %v1259_v17  ;;  %v1263_v19 = vld [vmem:[%s2028_s20 + $0x128] sm:$0xff]  ;;  %v1265_v20 = vld [vmem:[%s2028_s20 + $0x130] sm:$0xff] }
 0x1a4   : >> { %1262 = vst [vmem:[%s2024_s15 + $0x120] sm:$0xff] %v1261_v18  ;;  %1264 = vst [vmem:[%s2024_s15 + $0x128] sm:$0xff] %v1263_v19  ;;  %v1267_v21 = vld [vmem:[%s2028_s20 + $0x138] sm:$0xff]  ;;  %v1269_v23 = vld [vmem:[%s2028_s20 + $0x140] sm:$0xff] }
 0x1a5   : >> { %1266 = vst [vmem:[%s2024_s15 + $0x130] sm:$0xff] %v1265_v20  ;;  %v1271_v24 = vld [vmem:[%s2028_s20 + $0x148] sm:$0xff]  ;;  %1268 = vst [vmem:[%s2024_s15 + $0x138] sm:$0xff] %v1267_v21  ;;  %v1273_v25 = vld [vmem:[%s2028_s20 + $0x150] sm:$0xff] }
 0x1a6   : >> { %1270 = vst [vmem:[%s2024_s15 + $0x140] sm:$0xff] %v1269_v23  ;;  %1272 = vst [vmem:[%s2024_s15 + $0x148] sm:$0xff] %v1271_v24  ;;  %v1275_v26 = vld [vmem:[%s2028_s20 + $0x158] sm:$0xff]  ;;  %v1277_v27 = vld [vmem:[%s2028_s20 + $0x160] sm:$0xff] }
 0x1a7   : >> { %1274 = vst [vmem:[%s2024_s15 + $0x150] sm:$0xff] %v1273_v25  ;;  %1276 = vst [vmem:[%s2024_s15 + $0x158] sm:$0xff] %v1275_v26  ;;  %v1279_v28 = vld [vmem:[%s2028_s20 + $0x168] sm:$0xff]  ;;  %v1281_v6 = vld [vmem:[%s2028_s20 + $0x170] sm:$0xff] }
 0x1a8   : >> { %1278 = vst [vmem:[%s2024_s15 + $0x160] sm:$0xff] %v1277_v27  ;;  %v1283_v29 = vld [vmem:[%s2028_s20 + $0x178] sm:$0xff]  ;;  %1280 = vst [vmem:[%s2024_s15 + $0x168] sm:$0xff] %v1279_v28  ;;  %v1285_v30 = vld [vmem:[%s2028_s20 + $0x180] sm:$0xff] }
 0x1a9   : >> { %1282 = vst [vmem:[%s2024_s15 + $0x170] sm:$0xff] %v1281_v6  ;;  %1284 = vst [vmem:[%s2024_s15 + $0x178] sm:$0xff] %v1283_v29  ;;  %v1287_v31 = vld [vmem:[%s2028_s20 + $0x188] sm:$0xff]  ;;  %v1289_v32 = vld [vmem:[%s2028_s20 + $0x190] sm:$0xff] }
 0x1aa   : >> { %1286 = vst [vmem:[%s2024_s15 + $0x180] sm:$0xff] %v1285_v30  ;;  %1288 = vst [vmem:[%s2024_s15 + $0x188] sm:$0xff] %v1287_v31  ;;  %v1291_v33 = vld [vmem:[%s2028_s20 + $0x198] sm:$0xff]  ;;  %v1293_v34 = vld [vmem:[%s2028_s20 + $0x1a0] sm:$0xff] }
 0x1ab   : >> { %1290 = vst [vmem:[%s2024_s15 + $0x190] sm:$0xff] %v1289_v32  ;;  %v1295_v35 = vld [vmem:[%s2028_s20 + $0x1a8] sm:$0xff]  ;;  %1292 = vst [vmem:[%s2024_s15 + $0x198] sm:$0xff] %v1291_v33  ;;  %v1297_v36 = vld [vmem:[%s2028_s20 + $0x1b0] sm:$0xff]  ;;  %1185 = sbr.rel (!%p1182_p12) target bundleno = 401 (0x191), region = 122 }
 0x1ac   : >> { %1294 = vst [vmem:[%s2024_s15 + $0x1a0] sm:$0xff] %v1293_v34  ;;  %1296 = vst [vmem:[%s2024_s15 + $0x1a8] sm:$0xff] %v1295_v35  ;;  %v1299_v37 = vld [vmem:[%s2028_s20 + $0x1b8] sm:$0xff]  ;;  %v1301_v38 = vld [vmem:[%s2028_s20 + $0x1c0] sm:$0xff] }
 0x1ad   : >> { %1298 = vst [vmem:[%s2024_s15 + $0x1b0] sm:$0xff] %v1297_v36  ;;  %1300 = vst [vmem:[%s2024_s15 + $0x1b8] sm:$0xff] %v1299_v37  ;;  %v1303_v39 = vld [vmem:[%s2028_s20 + $0x1c8] sm:$0xff]  ;;  %v1305_v40 = vld [vmem:[%s2028_s20 + $0x1d0] sm:$0xff] }
 0x1ae   : >> { %1302 = vst [vmem:[%s2024_s15 + $0x1c0] sm:$0xff] %v1301_v38  ;;  %v1307_v41 = vld [vmem:[%s2028_s20 + $0x1d8] sm:$0xff]  ;;  %1304 = vst [vmem:[%s2024_s15 + $0x1c8] sm:$0xff] %v1303_v39  ;;  %v1309_v42 = vld [vmem:[%s2028_s20 + $0x1e0] sm:$0xff] }
 0x1af   : >> { %1306 = vst [vmem:[%s2024_s15 + $0x1d0] sm:$0xff] %v1305_v40  ;;  %1308 = vst [vmem:[%s2024_s15 + $0x1d8] sm:$0xff] %v1307_v41  ;;  %v1311_v43 = vld [vmem:[%s2028_s20 + $0x1e8] sm:$0xff]  ;;  %v1313_v44 = vld [vmem:[%s2028_s20 + $0x1f0] sm:$0xff] }
 0x1b0   : >> { %1310 = vst [vmem:[%s2024_s15 + $0x1e0] sm:$0xff] %v1309_v42  ;;  %1312 = vst [vmem:[%s2024_s15 + $0x1e8] sm:$0xff] %v1311_v43  ;;  %v1315_v45 = vld [vmem:[%s2028_s20 + $0x1f8] sm:$0xff]  ;;  %s2859_s20 = smov %s2725_s10 }
 0x1b1   : >> { %1314 = vst [vmem:[%s2024_s15 + $0x1f0] sm:$0xff] %v1313_v44  ;;  %1316 = vst [vmem:[%s2024_s15 + $0x1f8] sm:$0xff] %v1315_v45  ;;  %s2858_s15 = smov %s2728_s11 }
 0x1b2 PF: > { %s2833_s14 = sand.u32 63, %s2865_s12   ;;  %s1544_s17 = sshll.u32 %s2658_s6, 9 }
 0x1b3   : > { %s1328_s18 = scalar_lea.vmem %s2432_s26, %s1544_s17 [#allocation2]   ;;  %s1330_s21 = scalar_lea.vmem %s2652_s4, %s1544_s17  }
 0x1b4   : > { %p1538_p13 = scmp.le.s32.totalorder %s2833_s14, 0 }
 0x1b5   : > { %s2038_s22 = smov (!%p1538_p13), %s1330_s21   ;;  %s2042_s23 = smov (!%p1538_p13), %s1328_s18  }
 0x1b6   : > { %1421 = sbr.rel (%p1538_p13) target bundleno = 455 (0x1c7), region = 127  ;;  %s2046_s24 = smov (!%p1538_p13), 0  }
 0x1b7   : > { %s2050_s25 = smov (!%p1538_p13), 0  }
 0x1bd LB: >> { %v1340_v22 = vld [vmem:[%s2044_s23] sm:$0xff]  ;;  %s1342_s12 = sadd.s32 1, %s2048_s24  ;;  %s1334_s25 = sadd.s32 1, %s2052_s25   ;;  %s2052_s25 = sphi %s2050_s25, %s1334_s25   ;;  %s2048_s24 = sphi %s2046_s24, %s2047_s24   ;;  %s2044_s23 = sphi %s2042_s23, %s1347_s23   ;;  %s2040_s22 = sphi %s2038_s22, %s1348_s22  }
 0x1be   : >> { %1341 = vst [vmem:[%s2040_s22] sm:$0xff] %v1340_v22  ;;  %p1343_p0 = scmp.ge.s32.totalorder %s1342_s12, %s2833_s14  ;;  %p1333_p1 = scmp.ge.s32.totalorder %s1334_s25, %s2833_s14 }
 0x1c0   : >> { %s2869_s12 = smov (%p1343_p0, %s1342_s12), 0  ;;  %1336 = sbr.rel (!%p1333_p1) target bundleno = 445 (0x1bd), region = 133 }
 0x1c1   : >> { %s1539_s26 = sshll.u32 %s2869_s12, 3  ;;  %s2047_s24 = smov %s2869_s12  }
 0x1c2   : >> { %s1347_s23 = scalar_lea.vmem %s1328_s18, %s1539_s26 [#allocation2]   ;;  %s1348_s22 = scalar_lea.vmem %s1330_s21, %s1539_s26  }
 0x1c7 PF: > { %p10_p2 = scmp.ge.s32.totalorder %s2092_s16, 6   ;;  %s2861_s12 = smov %s2016_s13 }
 0x1c8   : > { %s2862_s13 = smov %s2100_s19  ;;  %s2863_s14 = smov %s2092_s16 }
 0x1c9   :  { %12 = sbr.rel (!%p10_p2) target bundleno = 2 (0x2), region = 144 }

</bundles_post_ra>
